<compile_context>
chip_gen: v7x
topology: tpu7x:2x2x1
jax: 0.10.0
libtpu: 0.0.40
codegen_flags: <defaults>
</compile_context>

<pallas_src>
import math

import jax
import jax.numpy as jnp
from jax.experimental import pallas as pl
from jax.experimental.pallas import tpu as pltpu

_TWO_PI = 2.0 * math.pi


def _sine_gen_kernel(rad_ref, ph1_ref, amp_sine_ref, amp_noise_ref, z_ref,
                     sine_ref, noise_ref):
    """One (BD, Lt, upp) tile; frame-rate refs are (BD, Lt, 1) lane-broadcasts.

    y(l, p) = ph1[l] + p * rad[l]   (cumulative phase in cycles, p = 0..upp-1)
    sin(2*pi*(y - integer_wraps)) == sin(2*pi*frac(y)), so no wrap bookkeeping.
    """
    shape3 = z_ref.shape                                       # (BD, Lt, upp)
    p = jax.lax.broadcasted_iota(jnp.int32, shape3, 2).astype(jnp.float32)
    y = ph1_ref[...] + p * rad_ref[...]                        # broadcast over lanes
    phase = y - jnp.floor(y)                                   # frac(y) in [0, 1)
    sine = jnp.sin(phase * _TWO_PI) * amp_sine_ref[...]        # sine_amp * uv folded in
    noise = amp_noise_ref[...] * z_ref[...]
    sine_ref[...] = sine + noise
    noise_ref[...] = noise


def _choose_frame_tile(L, upp, target_samples=8192):
    """Frames per grid step: multiple of 8 (sublane rule), ~target_samples
    output samples per step, and >=2 steps (v7x megacore) when the clip allows."""
    lt = max(8, (target_samples // max(upp, 1)) // 8 * 8)
    if lt >= L:
        # Whole clip would be one tile: split roughly in half (rounded to 8).
        lt = max(8, ((L + 15) // 16) * 8)
    return lt


class SineGeneratorPallas:
    """Pallas TPU port of the RVC SineGenerator forward pass (no parameters).

    Intentional differences vs. torch:
      * the Gaussian/uniform randoms come from jax.random, so the noise
        realization does not bit-match torch.randn (expected);
      * the phase-wrap cumsum of the reference is replaced by frac(), which is
        mathematically identical inside sin(2*pi*x).
    """

    def __init__(self, samp_rate, harmonic_num=0, sine_amp=0.1, noise_std=0.003,
                 voiced_threshold=0):
        self.sine_amp = float(sine_amp)
        self.noise_std = float(noise_std)
        self.harmonic_num = int(harmonic_num)
        self.dim = self.harmonic_num + 1
        self.sampling_rate = int(samp_rate)
        self.voiced_threshold = float(voiced_threshold)

    def __call__(self, f0, upp, key, rand_ini=None):
        # f0: (B, L) float32, 0 on unvoiced frames.  upp: python int.
        f0 = jnp.asarray(f0, jnp.float32)
        upp = int(upp)
        B, L = f0.shape
        D = self.dim
        BD = B * D
        T = L * upp

        k_ini, k_noise = jax.random.split(key)
        if rand_ini is None:
            rand_ini = jax.random.uniform(k_ini, (B, D), dtype=jnp.float32)
            rand_ini = rand_ini.at[:, 0].set(0.0)

        # ---------------- frame-rate prep: O(L*BD), plain jnp ----------------
        harm = jnp.arange(1, D + 1, dtype=jnp.float32)
        f0_h = f0[:, None, :] * harm[None, :, None]              # (B, D, L)
        rad = f0_h / float(self.sampling_rate)
        rad = rad - jnp.floor(rad)                               # torch `% 1`
        rad = rad.at[:, :, 0].add(rand_ini)                      # random initial phase

        # Cumulative phase at frame start, reduced mod 1 (stable f32 for long clips).
        step = rad * float(upp)
        step = step - jnp.floor(step)
        csum = jnp.cumsum(step, axis=2)
        ph0 = jnp.concatenate(
            [jnp.zeros((B, D, 1), jnp.float32), csum[:, :, :-1]], axis=2)
        ph0 = ph0 - jnp.floor(ph0)
        ph1 = ph0 + rad                                          # phase at sample p=0

        uv_f = (f0 > self.voiced_threshold).astype(jnp.float32)  # (B, L)
        amp_sine = self.sine_amp * uv_f
        amp_noise = self.noise_std * uv_f + (self.sine_amp / 3.0) * (1.0 - uv_f)
        amp_sine = jnp.broadcast_to(amp_sine[:, None, :], (B, D, L))
        amp_noise = jnp.broadcast_to(amp_noise[:, None, :], (B, D, L))

        rad2 = rad.reshape(BD, L)
        ph12 = ph1.reshape(BD, L)
        amps2 = amp_sine.reshape(BD, L)
        ampn2 = amp_noise.reshape(BD, L)

        # ---------------- frame tiling ----------------
        lt = _choose_frame_tile(L, upp)
        nb = pl.cdiv(L, lt)
        Lp = nb * lt
        if Lp != L:
            padf = lambda a: jnp.pad(a, ((0, 0), (0, Lp - L)))
            rad2, ph12, amps2, ampn2 = map(padf, (rad2, ph12, amps2, ampn2))

        to3 = lambda a: a[:, :, None]                            # (BD, Lp, 1)
        rad3, ph13, amps3, ampn3 = map(to3, (rad2, ph12, amps2, ampn2))

        # Standard-normal noise in the kernel's (BD, frame, within-frame) layout.
        z = jax.random.normal(k_noise, (BD, Lp, upp), dtype=jnp.float32)

        frame_spec = lambda: pl.BlockSpec((BD, lt, 1), lambda i: (0, i, 0))
        wave_spec = lambda: pl.BlockSpec((BD, lt, upp), lambda i: (0, i, 0))

        # VMEM budget: 3 sample-rate streams + 4 (lane-padded) frame-rate streams,
        # double buffered; keep a safe cap for v7x's 64 MiB VMEM.
        sample_block = 4 * BD * lt * upp
        frame_block = 4 * BD * ((lt + 7) // 8) * 8 * 128
        block_bytes = 2 * (3 * sample_block + 4 * frame_block)
        vmem_limit = int(min(max(4 * block_bytes, 32 * 1024 * 1024),
                             60 * 1024 * 1024))

        sine3, noise3 = pl.pallas_call(
            _sine_gen_kernel,
            out_shape=(jax.ShapeDtypeStruct((BD, Lp, upp), jnp.float32),
                       jax.ShapeDtypeStruct((BD, Lp, upp), jnp.float32)),
            grid_spec=pltpu.PrefetchScalarGridSpec(
                num_scalar_prefetch=0,
                grid=(nb,),
                in_specs=[frame_spec(), frame_spec(), frame_spec(), frame_spec(),
                          wave_spec()],
                out_specs=[wave_spec(), wave_spec()],
            ),
            compiler_params=pltpu.CompilerParams(
                dimension_semantics=("parallel",),
                vmem_limit_bytes=vmem_limit,
            ),
        )(rad3, ph13, amps3, ampn3, z)

        # ---------- glue back to the PyTorch (B, T, D) convention ----------
        sine = sine3[:, :L, :].reshape(B, D, T).transpose(0, 2, 1)
        noise = noise3[:, :L, :].reshape(B, D, T).transpose(0, 2, 1)
        uv = jnp.repeat(uv_f, upp, axis=1)[:, :, None]           # (B, T, 1)
        return sine, uv, noise


def _torch_reference_sine(f0, upp, samp_rate, dim, sine_amp, rand_ini):
    """Faithful jnp port of the PyTorch reference (noiseless sine_waves, before
    the *uv + noise step).  Used only as a correctness check."""
    B, L = f0.shape
    T = L * upp
    harm = jnp.arange(1, dim + 1, dtype=jnp.float32)
    f0_buf = f0[:, :, None] * harm[None, None, :]                # (B, L, D)
    rad = jnp.mod(f0_buf / samp_rate, 1.0)
    rad = rad.at[:, 0, :].add(rand_ini)
    tmp_over_one = jnp.cumsum(rad, axis=1) * upp
    # F.interpolate(mode='linear', align_corners=True), scale_factor=upp
    src = jnp.arange(T, dtype=jnp.float32) * (L - 1) / max(T - 1, 1)
    lo = jnp.clip(jnp.floor(src).astype(jnp.int32), 0, L - 1)
    hi = jnp.minimum(lo + 1, L - 1)
    w = (src - lo.astype(jnp.float32))[None, :, None]
    tmp_up = tmp_over_one[:, lo, :] * (1.0 - w) + tmp_over_one[:, hi, :] * w
    # F.interpolate(mode='nearest'), scale_factor=upp
    rad_up = jnp.repeat(rad, upp, axis=1)
    tmp_up = jnp.mod(tmp_up, 1.0)
    wrap = (tmp_up[:, 1:, :] - tmp_up[:, :-1, :]) < 0.0
    shift = jnp.concatenate(
        [jnp.zeros((B, 1, dim), jnp.float32), -wrap.astype(jnp.float32)], axis=1)
    return jnp.sin(jnp.cumsum(rad_up + shift, axis=1) * (2.0 * jnp.pi)) * sine_amp


if __name__ == "__main__":
    key = jax.random.PRNGKey(0)
    k_f0, k_mask, k_ini, k_gen = jax.random.split(key, 4)

    B, L, upp = 2, 8, 4
    harmonic_num = 2
    samp_rate = 16000
    D = harmonic_num + 1
    T = L * upp

    f0_vals = jax.random.uniform(k_f0, (B, L), minval=80.0, maxval=400.0)
    voiced = (jax.random.uniform(k_mask, (B, L)) > 0.3).astype(jnp.float32)
    f0 = (f0_vals * voiced).astype(jnp.float32)
    rand_ini = jax.random.uniform(k_ini, (B, D), dtype=jnp.float32).at[:, 0].set(0.0)

    gen = SineGeneratorPallas(samp_rate, harmonic_num=harmonic_num,
                              sine_amp=0.1, noise_std=0.003, voiced_threshold=0)
    sine, uv, noise = gen(f0, upp, k_gen, rand_ini=rand_ini)
    jax.block_until_ready((sine, uv, noise))

    assert sine.shape == (B, T, D)
    assert uv.shape == (B, T, 1)
    assert noise.shape == (B, T, D)
    assert bool(jnp.isfinite(sine).all() & jnp.isfinite(uv).all()
                & jnp.isfinite(noise).all())

    # uv must be binary and equal the repeated frame-rate voicing decision
    assert bool(jnp.all((uv == 0.0) | (uv == 1.0)))
    uv_ref = jnp.repeat((f0 > 0).astype(jnp.float32), upp, axis=1)[:, :, None]
    assert bool(jnp.all(uv == uv_ref))

    # Noiseless sine must match a faithful port of the PyTorch math
    # (sine - noise == sine_amp * sin(...) * uv).
    got = sine - noise
    want = _torch_reference_sine(f0, upp, samp_rate, D, 0.1, rand_ini) * uv_ref
    assert bool(jnp.allclose(got, want, atol=1e-3)), float(jnp.max(jnp.abs(got - want)))

    print("KERNEL_OK")
</pallas_src>

<mosaic_0001>
module attributes {stable_mosaic.version = 11 : i64} {
  func.func @_sine_gen_kernel(%arg0: i32, %arg1: memref<6x8x1xf32, #tpu.memory_space<vmem>>, %arg2: memref<6x8x1xf32, #tpu.memory_space<vmem>>, %arg3: memref<6x8x1xf32, #tpu.memory_space<vmem>>, %arg4: memref<6x8x1xf32, #tpu.memory_space<vmem>>, %arg5: memref<6x8x4xf32, #tpu.memory_space<vmem>>, %arg6: memref<6x8x4xf32, #tpu.memory_space<vmem>>, %arg7: memref<6x8x4xf32, #tpu.memory_space<vmem>>) attributes {dimension_semantics = [#tpu.dimension_semantics<parallel>], iteration_bounds = array<i64: 1>, scalar_prefetch = 0 : i64, scratch_operands = 0 : i64, tpu.core_type = #tpu.core_type<tc>, window_params = [{transform_indices = @transform_0, window_bounds = array<i64: 6, 8, 1>}, {transform_indices = @transform_1, window_bounds = array<i64: 6, 8, 1>}, {transform_indices = @transform_2, window_bounds = array<i64: 6, 8, 1>}, {transform_indices = @transform_3, window_bounds = array<i64: 6, 8, 1>}, {transform_indices = @transform_4, window_bounds = array<i64: 6, 8, 4>}, {transform_indices = @transform_5, window_bounds = array<i64: 6, 8, 4>}, {transform_indices = @transform_6, window_bounds = array<i64: 6, 8, 4>}]} {
    %0 = tpu.iota {dimensions = array<i32: 2>} : vector<6x8x4xi32>
    %1 = arith.sitofp %0 : vector<6x8x4xi32> to vector<6x8x4xf32>
    %c0 = arith.constant 0 : index
    %c0_0 = arith.constant 0 : index
    %c0_1 = arith.constant 0 : index
    %2 = vector.load %arg2[%c0, %c0_0, %c0_1] : memref<6x8x1xf32, #tpu.memory_space<vmem>>, vector<6x8x1xf32>
    %c0_2 = arith.constant 0 : index
    %c0_3 = arith.constant 0 : index
    %c0_4 = arith.constant 0 : index
    %3 = vector.load %arg1[%c0_2, %c0_3, %c0_4] : memref<6x8x1xf32, #tpu.memory_space<vmem>>, vector<6x8x1xf32>
    %4 = vector.broadcast %3 : vector<6x8x1xf32> to vector<6x8x4xf32>
    %5 = arith.mulf %1, %4 : vector<6x8x4xf32>
    %6 = vector.broadcast %2 : vector<6x8x1xf32> to vector<6x8x4xf32>
    %7 = arith.addf %6, %5 : vector<6x8x4xf32>
    %8 = math.floor %7 : vector<6x8x4xf32>
    %9 = arith.subf %7, %8 : vector<6x8x4xf32>
    %cst = arith.constant 6.28318548 : f32
    %10 = vector.broadcast %cst : f32 to vector<6x8x4xf32>
    %11 = arith.mulf %9, %10 : vector<6x8x4xf32>
    %12 = math.sin %11 : vector<6x8x4xf32>
    %c0_5 = arith.constant 0 : index
    %c0_6 = arith.constant 0 : index
    %c0_7 = arith.constant 0 : index
    %13 = vector.load %arg3[%c0_5, %c0_6, %c0_7] : memref<6x8x1xf32, #tpu.memory_space<vmem>>, vector<6x8x1xf32>
    %14 = vector.broadcast %13 : vector<6x8x1xf32> to vector<6x8x4xf32>
    %15 = arith.mulf %12, %14 : vector<6x8x4xf32>
    %c0_8 = arith.constant 0 : index
    %c0_9 = arith.constant 0 : index
    %c0_10 = arith.constant 0 : index
    %16 = vector.load %arg4[%c0_8, %c0_9, %c0_10] : memref<6x8x1xf32, #tpu.memory_space<vmem>>, vector<6x8x1xf32>
    %c0_11 = arith.constant 0 : index
    %c0_12 = arith.constant 0 : index
    %c0_13 = arith.constant 0 : index
    %17 = vector.load %arg5[%c0_11, %c0_12, %c0_13] : memref<6x8x4xf32, #tpu.memory_space<vmem>>, vector<6x8x4xf32>
    %18 = vector.broadcast %16 : vector<6x8x1xf32> to vector<6x8x4xf32>
    %19 = arith.mulf %18, %17 : vector<6x8x4xf32>
    %20 = arith.addf %15, %19 : vector<6x8x4xf32>
    %c0_14 = arith.constant 0 : index
    %c0_15 = arith.constant 0 : index
    %c0_16 = arith.constant 0 : index
    %21 = vector.load %arg6[%c0_14, %c0_15, %c0_16] : memref<6x8x4xf32, #tpu.memory_space<vmem>>, vector<6x8x4xf32>
    tpu.vector_store %arg6[%c0_14, %c0_15, %c0_16], %20 {strides = array<i32>} : memref<6x8x4xf32, #tpu.memory_space<vmem>>, vector<6x8x4xf32>,
    %c0_17 = arith.constant 0 : index
    %c0_18 = arith.constant 0 : index
    %c0_19 = arith.constant 0 : index
    %22 = vector.load %arg7[%c0_17, %c0_18, %c0_19] : memref<6x8x4xf32, #tpu.memory_space<vmem>>, vector<6x8x4xf32>
    tpu.vector_store %arg7[%c0_17, %c0_18, %c0_19], %19 {strides = array<i32>} : memref<6x8x4xf32, #tpu.memory_space<vmem>>, vector<6x8x4xf32>,
    return
  }
  func.func @transform_0(%arg0: i32) -> (i32, i32, i32) {
    %c0_i32 = arith.constant 0 : i32
    %c0_i32_0 = arith.constant 0 : i32
    %c0_i32_1 = arith.constant 0 : i32
    return %c0_i32, %arg0, %c0_i32_0 : i32, i32, i32
  }
  func.func @transform_1(%arg0: i32) -> (i32, i32, i32) {
    %c0_i32 = arith.constant 0 : i32
    %c0_i32_0 = arith.constant 0 : i32
    %c0_i32_1 = arith.constant 0 : i32
    return %c0_i32, %arg0, %c0_i32_0 : i32, i32, i32
  }
  func.func @transform_2(%arg0: i32) -> (i32, i32, i32) {
    %c0_i32 = arith.constant 0 : i32
    %c0_i32_0 = arith.constant 0 : i32
    %c0_i32_1 = arith.constant 0 : i32
    return %c0_i32, %arg0, %c0_i32_0 : i32, i32, i32
  }
  func.func @transform_3(%arg0: i32) -> (i32, i32, i32) {
    %c0_i32 = arith.constant 0 : i32
    %c0_i32_0 = arith.constant 0 : i32
    %c0_i32_1 = arith.constant 0 : i32
    return %c0_i32, %arg0, %c0_i32_0 : i32, i32, i32
  }
  func.func @transform_4(%arg0: i32) -> (i32, i32, i32) {
    %c0_i32 = arith.constant 0 : i32
    %c0_i32_0 = arith.constant 0 : i32
    %c0_i32_1 = arith.constant 0 : i32
    return %c0_i32, %arg0, %c0_i32_0 : i32, i32, i32
  }
  func.func @transform_5(%arg0: i32) -> (i32, i32, i32) {
    %c0_i32 = arith.constant 0 : i32
    %c0_i32_0 = arith.constant 0 : i32
    %c0_i32_1 = arith.constant 0 : i32
    return %c0_i32, %arg0, %c0_i32_0 : i32, i32, i32
  }
  func.func @transform_6(%arg0: i32) -> (i32, i32, i32) {
    %c0_i32 = arith.constant 0 : i32
    %c0_i32_0 = arith.constant 0 : i32
    %c0_i32_1 = arith.constant 0 : i32
    return %c0_i32, %arg0, %c0_i32_0 : i32, i32, i32
  }
}

</mosaic_0001>

<bundles_post_ra>
// kernel: tpu_custom_call.1
= control target key start
LH: loop header
LB: loop body
LE: loop exit
PB: predicated region body
PF: predicated region fallthrough
CT: control target
= control target key end

     0   :  { %v949_v0 = vmov 0   ;;  %v22_v25 = vlaneseq  ;;  %s1739_s0 = inlined_call_operand.vmem [shape: f32[6,8,1], index: 0, kind: input, shape index: {}]   ;;  %s1740_s1 = inlined_call_operand.vmem [shape: f32[6,8,1], index: 1, kind: input, shape index: {}]   ;;  %s1741_s2 = inlined_call_operand.vmem [shape: f32[6,8,1], index: 2, kind: input, shape index: {}]   ;;  %s1742_s3 = inlined_call_operand.vmem [shape: f32[6,8,1], index: 3, kind: input, shape index: {}]   ;;  %s1743_s4 = inlined_call_operand.vmem [shape: f32[6,8,4], index: 4, kind: input, shape index: {}]   ;;  %s1744_s6 = inlined_call_operand.vmem [shape: f32[6,8,4], index: 6, kind: output, shape index: {1}]   ;;  %s1745_s5 = inlined_call_operand.vmem [shape: f32[6,8,4], index: 5, kind: output, shape index: {0}]  }
   0x1   :  { %924 = vset.pattern.permute.xlu1 %v949_v0  ;;  %923 = vset.pattern.permute.xlu0 %v949_v0  ;;  %v33_v1 = vld [vmem:[%s1739_s0 + $0x10] sm:$0xff]  ;;  %v31_v2 = vld [vmem:[%s1739_s0] sm:$0xff]  ;;  %v34_v3 = vld [vmem:[%s1739_s0 + $0x18] sm:$0xff] }
   0x2   :  { %49 = vperm.xlu1 %924, %v33_v1   ;;  %39 = vperm.xlu0 %923, %v31_v2   ;;  %v32_v4 = vld [vmem:[%s1739_s0 + $0x8] sm:$0xff]  ;;  %v35_v6 = vld [vmem:[%s1739_s0 + $0x20] sm:$0xff]  ;;  %v28_v9 = vld [vmem:[%s1740_s1 + $0x18] sm:$0xff]  ;;  %v23_v28 = vand.u32 127, %v22_v25 }
   0x3   :  { %v36_v5 = vld [vmem:[%s1739_s0 + $0x28] sm:$0xff]  ;;  %v25_v8 = vld [vmem:[%s1740_s1] sm:$0xff]  ;;  %v27_v10 = vld [vmem:[%s1740_s1 + $0x10] sm:$0xff] }
   0x4   :  { %v26_v7 = vld [vmem:[%s1740_s1 + $0x8] sm:$0xff]  ;;  %v29_v12 = vld [vmem:[%s1740_s1 + $0x20] sm:$0xff]  ;;  %v754_v15 = vld [vmem:[%s1741_s2 + $0x18] sm:$0xff]  ;;  %v24_v31 = vcvt.s32.f32 %v23_v28 }
   0x5   :  { %v30_v11 = vld [vmem:[%s1740_s1 + $0x28] sm:$0xff]  ;;  %v751_v14 = vld [vmem:[%s1741_s2] sm:$0xff]  ;;  %v753_v16 = vld [vmem:[%s1741_s2 + $0x10] sm:$0xff] }
   0x6   :  { %54 = vperm.xlu1 %924, %v34_v3   ;;  %44 = vperm.xlu0 %923, %v32_v4   ;;  %v752_v13 = vld [vmem:[%s1741_s2 + $0x8] sm:$0xff]  ;;  %v755_v18 = vld [vmem:[%s1741_s2 + $0x20] sm:$0xff]  ;;  %v796_v21 = vld [vmem:[%s1742_s3 + $0x18] sm:$0xff] }
   0x7   :  { %v756_v17 = vld [vmem:[%s1741_s2 + $0x28] sm:$0xff]  ;;  %v793_v20 = vld [vmem:[%s1742_s3] sm:$0xff]  ;;  %v795_v22 = vld [vmem:[%s1742_s3 + $0x10] sm:$0xff] }
   0x8   :  { %v794_v19 = vld [vmem:[%s1742_s3 + $0x8] sm:$0xff]  ;;  %v797_v24 = vld [vmem:[%s1742_s3 + $0x20] sm:$0xff] }
   0x9   :  { %v798_v23 = vld [vmem:[%s1742_s3 + $0x28] sm:$0xff] }
   0xa   :  { %64 = vperm.xlu1 %924, %v36_v5   ;;  %59 = vperm.xlu0 %923, %v35_v6  }
   0xe   :  { %80 = vperm.xlu1 %924, %v26_v7   ;;  %75 = vperm.xlu0 %923, %v25_v8  }
  0x12   :  { %90 = vperm.xlu1 %924, %v28_v9   ;;  %85 = vperm.xlu0 %923, %v27_v10  }
  0x16   :  { %100 = vperm.xlu1 %924, %v30_v11   ;;  %95 = vperm.xlu0 %923, %v29_v12  }
  0x1a   :  { %764 = vperm.xlu1 %924, %v752_v13   ;;  %759 = vperm.xlu0 %923, %v751_v14  }
  0x1e   :  { %774 = vperm.xlu1 %924, %v754_v15   ;;  %769 = vperm.xlu0 %923, %v753_v16  }
  0x22   :  { %784 = vperm.xlu1 %924, %v756_v17   ;;  %779 = vperm.xlu0 %923, %v755_v18  }
  0x26   :  { %812 = vperm.xlu1 %924, %v794_v19   ;;  %807 = vperm.xlu0 %923, %v793_v20  }
  0x2a   :  { %822 = vperm.xlu1 %924, %v796_v21   ;;  %817 = vperm.xlu0 %923, %v795_v22  }
  0x2e   :  { %832 = vperm.xlu1 %924, %v798_v23   ;;  %827 = vperm.xlu0 %923, %v797_v24  }
  0x81   :  { %v50_v26 = vpop.permute.xlu1 %49  ;;  %v40_v27 = vpop.permute.xlu0 %39 }
  0x82   :  { %v67_v34 = vmul.f32 %v40_v27, %v24_v31  ;;  %v69_v40 = vmul.f32 %v50_v26, %v24_v31  ;;  %v950_v27 = vmov 2475754826  }
  0x85   :  { %v55_v29 = vpop.permute.xlu1 %54  ;;  %v45_v30 = vpop.permute.xlu0 %44 }
  0x86   :  { %v68_v35 = vmul.f32 %v45_v30, %v24_v31  ;;  %v70_v41 = vmul.f32 %v55_v29, %v24_v31 }
  0x89   :  { %v65_v32 = vpop.permute.xlu1 %64  ;;  %v60_v33 = vpop.permute.xlu0 %59 }
  0x8a   :  { %v72_v54 = vmul.f32 %v65_v32, %v24_v31  ;;  %v71_v55 = vmul.f32 %v60_v33, %v24_v31  ;;  %v951_v33 = vmov 2131351028  }
  0x8d   :  { %v81_v36 = vpop.permute.xlu1 %80  ;;  %v76_v37 = vpop.permute.xlu0 %75 }
  0x8e   :  { %v104_v38 = vadd.f32 %v81_v36, %v68_v35  ;;  %v103_v39 = vadd.f32 %v76_v37, %v67_v34  ;;  %v952_v36 = vmov 683565275  }
  0x90   :  { %v110_v42 = vfloor.f32 %v104_v38  ;;  %v109_v43 = vfloor.f32 %v103_v39 }
  0x91   :  { %v91_v44 = vpop.permute.xlu1 %90  ;;  %v86_v45 = vpop.permute.xlu0 %85 }
  0x92   :  { %v116_v46 = vsub.f32 %v104_v38, %v110_v42  ;;  %v115_v47 = vsub.f32 %v103_v39, %v109_v43  ;;  %v106_v48 = vadd.f32 %v91_v44, %v70_v41  ;;  %v105_v49 = vadd.f32 %v86_v45, %v69_v40 }
  0x93   :  { %v953_v39 = vmov 2102212464  }
  0x94   :  { %v1063_v50 = vmul.f32 6.2831855, %v116_v46  ;;  %v1065_v51 = vmul.f32 6.2831855, %v115_v47  ;;  %v112_v52 = vfloor.f32 %v106_v48  ;;  %v111_v53 = vfloor.f32 %v105_v49 }
  0x95   :  { %v101_v56 = vpop.permute.xlu1 %100  ;;  %v96_v57 = vpop.permute.xlu0 %95  ;;  %v954_v47 = vmov 920167782  }
  0x96   :  { %v234_v58 = vand.u32 2139095040, %v1063_v50  ;;  %v130_v59 = vand.u32 2139095040, %v1065_v51  ;;  %v118_v60 = vsub.f32 %v106_v48, %v112_v52  ;;  %v117_v61 = vsub.f32 %v105_v49, %v111_v53 }
  0x97   :  { %v108_v62 = vadd.f32 %v101_v56, %v72_v54  ;;  %v107_v63 = vadd.f32 %v96_v57, %v71_v55  ;;  %v231_v5 = vand.u32 2147483647, %v1063_v50 }
  0x98   :  { %v235_v0 = vshrl.u32 %v234_v58, 23  ;;  %v131_v1 = vshrl.u32 %v130_v59, 23  ;;  %v1069_v2 = vmul.f32 6.2831855, %v118_v60  ;;  %v1071_v3 = vmul.f32 6.2831855, %v117_v61 }
  0x99   :  { %v114_v4 = vfloor.f32 %v108_v62  ;;  %v113_v9 = vfloor.f32 %v107_v63  ;;  %v238_v13 = vand.u32 8388607, %v231_v5  ;;  %v955_v58 = vmov 1326507024  }
  0x9a   :  { %v872_v6 = vadd.s32 4294967169, %v235_v0  ;;  %v868_v7 = vadd.s32 4294967169, %v131_v1  ;;  %v442_v8 = vand.u32 2139095040, %v1069_v2  ;;  %v338_v14 = vand.u32 2139095040, %v1071_v3 }
  0x9b   :  { %v120_v15 = vsub.f32 %v108_v62, %v114_v4  ;;  %v119_v16 = vsub.f32 %v107_v63, %v113_v9  ;;  %v239_v20 = vor.u32 8388608, %v238_v13 }
  0x9c   :  { %v241_v10 = vadd.s32 1, %v872_v6  ;;  %v443_v11 = vshrl.u32 %v442_v8, 23  ;;  %v137_v12 = vadd.s32 1, %v868_v7  ;;  %v339_v22 = vshrl.u32 %v338_v14, 23 }
  0x9d   :  { %v1078_v23 = vmul.f32 6.2831855, %v120_v15  ;;  %v1080_v24 = vmul.f32 6.2831855, %v119_v16  ;;  %v1083_v29 = vshll.u32 %v239_v20, 8 }
  0x9e   :  { %vm242_vm0 = vcmp.gt.s32.totalorder %v241_v10, 0  ;;  %v880_v19 = vadd.s32 4294967169, %v443_v11  ;;  %vm138_vm1 = vcmp.gt.s32.totalorder %v137_v12, 0  ;;  %v876_v30 = vadd.s32 4294967169, %v339_v22 }
  0x9f   :  { %v243_v17 = vsel %vm242_vm0, %v241_v10, 0  ;;  %v139_v25 = vsel %vm138_vm1, %v137_v12, 0  ;;  %v650_v31 = vand.u32 2139095040, %v1078_v23  ;;  %v546_v32 = vand.u32 2139095040, %v1080_v24 }
  0xa0   :  { %v245_v18 = vand.u32 31, %v243_v17  ;;  %v449_v26 = vadd.s32 1, %v880_v19  ;;  %v1088_v35 = vand.u32 31, %v139_v25  ;;  %v244_v41 = vshrl.u32 %v243_v17, 5 }
  0xa1   :  { %v1093_v42 = vshrl.u32 %v139_v25, 5  ;;  %v1098_v49 = vadd.s32 1, %v876_v30  ;;  %v651_v52 = vshrl.u32 %v650_v31, 23  ;;  %v547_v53 = vshrl.u32 %v546_v32, 23 }
  0xa2   :  { %v246_v21 = vsub.s32 32, %v245_v18  ;;  %v248_v37 = vshll.u32 %v952_v36, %v245_v18  ;;  %v251_v38 = vshll.u32 %v950_v27, %v245_v18  ;;  %vm450_vm2 = vcmp.gt.s32.totalorder %v449_v26, 0 }
  0xa3   :  { %v254_v43 = vshll.u32 %v951_v33, %v245_v18  ;;  %v257_v46 = vshll.u32 %v953_v39, %v245_v18  ;;  %v142_v55 = vsub.s32 32, %v1088_v35  ;;  %v260_v57 = vshll.u32 %v954_v47, %v245_v18 }
  0xa4   :  { %v249_v28 = vshrl.u32 %v950_v27, %v246_v21  ;;  %v252_v34 = vshrl.u32 %v951_v33, %v246_v21  ;;  %v255_v40 = vshrl.u32 %v953_v39, %v246_v21  ;;  %v258_v48 = vshrl.u32 %v954_v47, %v246_v21 }
  0xa5   :  { %v261_v59 = vshrl.u32 %v955_v58, %v246_v21  ;;  %v1104_v60 = vsel %vm450_vm2, %v449_v26, 0  ;;  %v247_v61 = vshrl.u32 %v952_v36, %v246_v21  ;;  %vm263_vm3 = vcmp.lt.s32.totalorder %v244_v41, 1 }
  0xa6   :  { %v250_v44 = vor.u32 %v249_v28, %v248_v37  ;;  %v253_v45 = vor.u32 %v252_v34, %v251_v38  ;;  %v256_v54 = vor.u32 %v255_v40, %v254_v43  ;;  %v259_v56 = vor.u32 %v258_v48, %v257_v46 }
  0xa7   :  { %vm264_vm4 = vcmp.lt.s32.totalorder %v244_v41, 2  ;;  %v262_v62 = vor.u32 %v261_v59, %v260_v57  ;;  %vm265_vm5 = vcmp.lt.s32.totalorder %v244_v41, 3  ;;  %vm266_vm6 = vcmp.lt.s32.totalorder %v244_v41, 4 }
  0xa8   :  { %v271_v63 = vsel %vm263_vm3, %v250_v44, %v253_v45  ;;  %v268_v0 = vsel %vm266_vm6, %v256_v54, 2102212464  ;;  %v272_v1 = vsel %vm266_vm6, %v259_v56, 920167782  ;;  %v275_v4 = vsel %vm263_vm3, %v253_v45, %v256_v54 }
  0xa9   :  { %v127_v6 = vand.u32 2147483647, %v1065_v51  ;;  %v267_v7 = vsel %vm263_vm3, %v247_v61, %v250_v44  ;;  %v269_v8 = vsel %vm265_vm5, %v253_v45, %v268_v0  ;;  %v273_v9 = vsel %vm265_vm5, %v256_v54, %v272_v1 }
  0xaa   :  { %v276_v10 = vsel %vm266_vm6, %v262_v62, 1326507024  ;;  %v888_v11 = vadd.s32 4294967169, %v651_v52  ;;  %v884_v12 = vadd.s32 4294967169, %v547_v53  ;;  %v274_v13 = vsel %vm264_vm4, %v271_v63, %v273_v9 }
  0xab   :  { %v277_v14 = vsel %vm265_vm5, %v259_v56, %v276_v10  ;;  %v1110_v15 = vand.u32 31, %v1104_v60  ;;  %v1114_v17 = vmul.u32.u64.low %v1083_v29, %v274_v13  ;;  %v1115_v18 = vmul.u32.u64.high %v1083_v29, %v274_v13, %v1114_v17 }
  0xac   :  { %v278_v16 = vsel %vm264_vm4, %v275_v4, %v277_v14  ;;  %v270_v19 = vsel %vm264_vm4, %v267_v7, %v269_v8  ;;  %v134_v22 = vand.u32 8388607, %v127_v6  ;;  %v144_v25 = vshll.u32 %v952_v36, %v1088_v35 }
  0xad   :  { %v1120_v20 = vmul.u32.u64.low %v1083_v29, %v278_v16  ;;  %v1121_v21 = vmul.u32.u64.high %v1083_v29, %v278_v16, %v1120_v20  ;;  %v145_v26 = vshrl.u32 %v950_v27, %v142_v55  ;;  %v147_v28 = vshll.u32 %v950_v27, %v1088_v35 }
  0xae   :  { %v148_v30 = vshrl.u32 %v951_v33, %v142_v55  ;;  %v150_v31 = vshll.u32 %v951_v33, %v1088_v35  ;;  %v151_v32 = vshrl.u32 %v953_v39, %v142_v55  ;;  %v153_v34 = vshll.u32 %v953_v39, %v1088_v35 }
  0xaf   :  { %v154_v37 = vshrl.u32 %v954_v47, %v142_v55  ;;  %vm346_vm7 = vcmp.gt.s32.totalorder %v1098_v49, 0  ;;  %v289_v38 = vadd.s32 1, %v1115_v18  ;;  %v143_v40 = vshrl.u32 %v952_v36, %v142_v55 }
  0xb0   :  { %v146_v41 = vor.u32 %v145_v26, %v144_v25  ;;  %v149_v43 = vor.u32 %v148_v30, %v147_v28  ;;  %v286_v44 = vmul.u32 %v1083_v29, %v270_v19  ;;  %vm288_vm8 = vc.u32 %v1121_v21, %v1114_v17 }
  0xb1   :  { %v152_v45 = vor.u32 %v151_v32, %v150_v31  ;;  %v155_v46 = vor.u32 %v154_v37, %v153_v34  ;;  %v290_v48 = vsel %vm288_vm8, %v289_v38, %v1115_v18  ;;  %v135_v52 = vor.u32 8388608, %v134_v22 }
  0xb2   :  { %v156_v53 = vshll.u32 %v954_v47, %v1088_v35  ;;  %v157_v54 = vshrl.u32 %v955_v58, %v142_v55  ;;  %v291_v56 = vadd.s32 %v290_v48, %v286_v44  ;;  %vm159_vm9 = vcmp.lt.s32.totalorder %v1093_v42, 1 }
  0xb3   :  { %vm161_vm10 = vcmp.lt.s32.totalorder %v1093_v42, 3  ;;  %vm162_vm11 = vcmp.lt.s32.totalorder %v1093_v42, 4  ;;  %v167_v59 = vsel %vm159_vm9, %v146_v41, %v149_v43  ;;  %vm160_vm12 = vcmp.lt.s32.totalorder %v1093_v42, 2 }
  0xb4   :  { %v158_v29 = vor.u32 %v157_v54, %v156_v53  ;;  %v164_v57 = vsel %vm162_vm11, %v152_v45, 2102212464  ;;  %v168_v61 = vsel %vm162_vm11, %v155_v46, 920167782  ;;  %v292_v62 = vadd.s32 536870912, %v291_v56 }
  0xb5   :  { %v169_v35 = vsel %vm161_vm10, %v152_v45, %v168_v61  ;;  %v171_v55 = vsel %vm159_vm9, %v149_v43, %v152_v45  ;;  %v657_v63 = vadd.s32 1, %v888_v11  ;;  %v175_v4 = vshll.u32 %v135_v52, 8 }
  0xb6   :  { %v170_v0 = vsel %vm160_vm12, %v167_v59, %v169_v35  ;;  %v172_v1 = vsel %vm162_vm11, %v158_v29, 1326507024  ;;  %v1159_v7 = vshrl.u32 %v292_v62, 30  ;;  %v163_v8 = vsel %vm159_vm9, %v143_v40, %v146_v41 }
  0xb7   :  { %v165_v9 = vsel %vm161_vm10, %v149_v43, %v164_v57  ;;  %v173_v10 = vsel %vm161_vm10, %v155_v46, %v172_v1  ;;  %v553_v13 = vadd.s32 1, %v884_v12  ;;  %v1182_v25 = vsel %vm346_vm7, %v1098_v49, 0 }
  0xb8   :  { %v174_v11 = vsel %vm160_vm12, %v171_v55, %v173_v10  ;;  %v1169_v14 = vmul.u32.u64.low %v175_v4, %v170_v0  ;;  %v1170_v16 = vmul.u32.u64.high %v175_v4, %v170_v0, %v1169_v14  ;;  %v294_v18 = vshll.u32 %v1159_v7, 30 }
  0xb9   :  { %v1174_v19 = vmul.u32.u64.low %v175_v4, %v174_v11  ;;  %v1175_v20 = vmul.u32.u64.high %v175_v4, %v174_v11, %v1174_v19  ;;  %v166_v22 = vsel %vm160_vm12, %v163_v8, %v165_v9  ;;  %vm658_vm13 = vcmp.gt.s32.totalorder %v657_v63, 0 }
  0xba   :  { %v1184_v12 = vsub.s32 %v291_v56, %v294_v18  ;;  %v1187_v26 = vsub.s32 32, %v1110_v15  ;;  %vm554_vm14 = vcmp.gt.s32.totalorder %v553_v13, 0  ;;  %v185_v28 = vadd.s32 1, %v1170_v16 }
  0xbb   :  { %v182_v31 = vmul.u32 %v175_v4, %v166_v22  ;;  %vm184_vm15 = vc.u32 %v1175_v20, %v1169_v14  ;;  %v1194_v42 = vshrl.u32 %v1104_v60, 5  ;;  %v1197_v49 = vand.u32 31, %v1182_v25 }
  0xbc   :  { %v297_v30 = vsub.s32 0, %v1184_v12  ;;  %v1199_v32 = vsel %vm658_vm13, %v657_v63, 0  ;;  %v186_v34 = vsel %vm184_vm15, %v185_v28, %v1170_v16  ;;  %v1202_v37 = vsel %vm554_vm14, %v553_v13, 0 }
  0xbd   :  { %v187_v40 = vadd.s32 %v186_v34, %v182_v31  ;;  %v439_v41 = vand.u32 2147483647, %v1069_v2  ;;  %v457_v43 = vshrl.u32 %v950_v27, %v1187_v26  ;;  %v460_v60 = vshrl.u32 %v951_v33, %v1187_v26 }
  0xbe   :  { %v873_v38 = vmin.u32 %v297_v30, %v1184_v12  ;;  %v465_v44 = vshll.u32 %v953_v39, %v1110_v15  ;;  %v466_v45 = vshrl.u32 %v954_v47, %v1187_v26  ;;  %v1215_v46 = vand.u32 31, %v1199_v32 }
  0xbf   :  { %v456_v52 = vshll.u32 %v952_v36, %v1110_v15  ;;  %v463_v53 = vshrl.u32 %v953_v39, %v1187_v26  ;;  %v188_v54 = vadd.s32 536870912, %v187_v40  ;;  %v459_v56 = vshll.u32 %v950_v27, %v1110_v15 }
  0xc0   :  { %v299_v48 = vclz %v873_v38  ;;  %v467_v29 = vor.u32 %v466_v45, %v465_v44  ;;  %v469_v57 = vshrl.u32 %v955_v58, %v1187_v26  ;;  %v287_v59 = vadd.s32 %v1114_v17, %v1121_v21 }
  0xc1   :  { %v446_v62 = vand.u32 8388607, %v439_v41  ;;  %v462_v35 = vshll.u32 %v951_v33, %v1110_v15  ;;  %v1231_v55 = vshrl.u32 %v188_v54, 30  ;;  %v458_v63 = vor.u32 %v457_v43, %v456_v52 }
  0xc2   :  { %v874_v61 = vadd.s32 4294967294, %v299_v48  ;;  %v461_v0 = vor.u32 %v460_v60, %v459_v56  ;;  %v468_v1 = vshll.u32 %v954_v47, %v1110_v15  ;;  %vm233_vm0 = vcmp.lt.s32.totalorder %v1063_v50, 0 }
  0xc3   :  { %v317_v4 = vsub.s32 4, %v1159_v7  ;;  %v464_v17 = vor.u32 %v463_v53, %v462_v35  ;;  %vm474_vm2 = vcmp.lt.s32.totalorder %v1194_v42, 4  ;;  %v190_v8 = vshll.u32 %v1231_v55, 30 }
  0xc4   :  { %vm875_vm1 = vcmp.lt.s32.totalorder %v874_v61, 0  ;;  %v470_v9 = vor.u32 %v469_v57, %v468_v1  ;;  %v480_v10 = vsel %vm474_vm2, %v467_v29, 920167782  ;;  %v447_v16 = vor.u32 8388608, %v446_v62 }
  0xc5   :  { %v302_v21 = vsel %vm875_vm1, 0, %v874_v61  ;;  %vm471_vm3 = vcmp.lt.s32.totalorder %v1194_v42, 1  ;;  %v1243_v18 = vsub.s32 %v187_v40, %v190_v8  ;;  %vm473_vm4 = vcmp.lt.s32.totalorder %v1194_v42, 3 }
  0xc6   :  { %v303_v13 = vsub.s32 32, %v302_v21  ;;  %v307_v11 = vsub.s32 4294967266, %v302_v21  ;;  %v304_v15 = vshll.u32 %v1184_v12, %v302_v21  ;;  %v479_v19 = vsel %vm471_vm3, %v458_v63, %v461_v0 }
  0xc7   :  { %vm1250_vm5 = vcmp.le.f32.partialorder %v231_v5, 0.7853982  ;;  %v481_v31 = vsel %vm473_vm4, %v464_v17, %v480_v10  ;;  %v483_v12 = vsel %vm471_vm3, %v461_v0, %v464_v17  ;;  %v193_v34 = vsub.s32 0, %v1243_v18 }
  0xc8   :  { %v305_v28 = vshrl.u32 %v287_v59, %v303_v13  ;;  %v308_v30 = vadd.s32 127, %v307_v11  ;;  %vm472_vm6 = vcmp.lt.s32.totalorder %v1194_v42, 2  ;;  %v476_v38 = vsel %vm474_vm2, %v464_v17, 2102212464 }
  0xc9   :  { %v484_v5 = vsel %vm474_vm2, %v470_v9, 1326507024  ;;  %v487_v44 = vshll.u32 %v447_v16, 8  ;;  %v869_v45 = vmin.u32 %v193_v34, %v1243_v18  ;;  %v455_v48 = vshrl.u32 %v952_v36, %v1187_v26 }
  0xca   :  { %v306_v40 = vor.u32 %v305_v28, %v304_v15  ;;  %v309_v43 = vshll.u32 %v308_v30, 23  ;;  %v485_v60 = vsel %vm473_vm4, %v467_v29, %v484_v5  ;;  %v482_v52 = vsel %vm472_vm6, %v479_v19, %v481_v31 }
  0xcb   :  { %v486_v53 = vsel %vm472_vm6, %v483_v12, %v485_v60  ;;  %v1274_v54 = vand.u32 31, %v1202_v37  ;;  %v318_v29 = vsel %vm233_vm0, %v317_v4, %v1159_v7  ;;  %v195_v61 = vclz %v869_v45 }
  0xcc   :  { %v310_v56 = vor.u32 4788187, %v309_v43  ;;  %v1276_v57 = vmul.u32.u64.low %v487_v44, %v486_v53  ;;  %v1277_v59 = vmul.u32.u64.high %v487_v44, %v486_v53, %v1276_v57  ;;  %v475_v26 = vsel %vm471_vm3, %v455_v48, %v458_v63 }
  0xcd   :  { %v477_v62 = vsel %vm473_vm4, %v461_v0, %v476_v38  ;;  %v313_v1 = vcvt.s32.f32 %v306_v40  ;;  %v1286_v17 = vmul.u32.u64.low %v487_v44, %v482_v52  ;;  %v1287_v21 = vmul.u32.u64.high %v487_v44, %v482_v52, %v1286_v17 }
  0xce   :  { %v311_v35 = vand.u32 2147483647, %v310_v56  ;;  %v1291_v8 = vshrl.u32 %v1182_v25, 5  ;;  %v1294_v9 = vsub.s32 32, %v1197_v49  ;;  %vm129_vm7 = vcmp.lt.s32.totalorder %v1065_v51, 0 }
  0xcf   :  { %v870_v7 = vadd.s32 4294967294, %v195_v61  ;;  %v1298_v63 = vshrl.u32 %v1199_v32, 5  ;;  %v1301_v0 = vsub.s32 32, %v1215_v46  ;;  %v478_v10 = vsel %vm472_vm6, %v475_v26, %v477_v62 }
  0xd0   :  { %v314_v4 = vmul.f32 %v313_v1, %v311_v35  ;;  %v1306_v13 = vsub.s32 32, %v1274_v54  ;;  %v320_v25 = vsel %vm1250_vm5, 0, %v318_v29  ;;  %vm496_vm9 = vc.u32 %v1277_v59, %v1286_v17 }
  0xd1   :  { %vm871_vm8 = vcmp.lt.s32.totalorder %v870_v7, 0  ;;  %v213_v16 = vsub.s32 4, %v1231_v55  ;;  %v497_v15 = vadd.s32 1, %v1287_v21  ;;  %v183_v42 = vadd.s32 %v1169_v14, %v1175_v20 }
  0xd2   :  { %v315_v11 = vxor.u32 2147483648, %v314_v4  ;;  %v198_v32 = vsel %vm871_vm8, 0, %v870_v7  ;;  %v494_v30 = vmul.u32 %v487_v44, %v478_v10  ;;  %v324_v12 = vadd.s32 3, %v320_v25 }
  0xd3   :  { %v199_v19 = vsub.s32 32, %v198_v32  ;;  %v203_v28 = vsub.s32 4294967266, %v198_v32  ;;  %v200_v34 = vshll.u32 %v1243_v18, %v198_v32  ;;  %v498_v38 = vsel %vm496_vm9, %v497_v15, %v1287_v21 }
  0xd4   :  { %v316_v31 = vsel %vm233_vm0, %v315_v11, %v314_v4  ;;  %vm1325_vm10 = vcmp.le.f32.partialorder %v127_v6, 0.7853982  ;;  %v499_v43 = vadd.s32 %v498_v38, %v494_v30  ;;  %v214_v60 = vsel %vm129_vm7, %v213_v16, %v1231_v55 }
  0xd5   :  { %v319_v5 = vsel %vm1250_vm5, %v1063_v50, %v316_v31  ;;  %v201_v14 = vshrl.u32 %v183_v42, %v199_v19  ;;  %v204_v20 = vadd.s32 127, %v203_v28  ;;  %v335_v18 = vand.u32 2147483647, %v1071_v3 }
  0xd6   :  { %v352_v44 = vshll.u32 %v952_v36, %v1197_v49  ;;  %v353_v22 = vshrl.u32 %v950_v27, %v1294_v9  ;;  %925 = vcosq.f32 %v319_v5  ;;  %v500_v48 = vadd.s32 536870912, %v499_v43 }
  0xd7   :  { %v202_v6 = vor.u32 %v201_v14, %v200_v34  ;;  %v205_v45 = vshll.u32 %v204_v20, 23  ;;  %v359_v52 = vshrl.u32 %v953_v39, %v1294_v9  ;;  %v361_v53 = vshll.u32 %v953_v39, %v1197_v49 }
  0xd8   :  { %v362_v55 = vshrl.u32 %v954_v47, %v1294_v9  ;;  %v365_v56 = vshrl.u32 %v955_v58, %v1294_v9  ;;  %927 = vsinq.f32 %v319_v5  ;;  %v501_v29 = vshrl.u32 %v500_v48, 30 }
  0xd9   :  { %v206_v57 = vor.u32 4788187, %v205_v45  ;;  %v356_v61 = vshrl.u32 %v951_v33, %v1294_v9  ;;  %v342_v26 = vand.u32 8388607, %v335_v18  ;;  %v358_v62 = vshll.u32 %v951_v33, %v1197_v49 }
  0xda   :  { %v363_v35 = vor.u32 %v362_v55, %v361_v53  ;;  %v364_v1 = vshll.u32 %v954_v47, %v1197_v49  ;;  %v209_v7 = vcvt.s32.f32 %v202_v6  ;;  %v502_v4 = vshll.u32 %v501_v29, 30 }
  0xdb   :  { %v207_v21 = vand.u32 2147483647, %v206_v57  ;;  %v355_v10 = vshll.u32 %v950_v27, %v1197_v49  ;;  %v1355_v25 = vand.u32 3, %v324_v12  ;;  %vm1359_vm11 = vcmp.le.f32.partialorder %v439_v41, 0.7853982 }
  0xdc   :  { %v354_v32 = vor.u32 %v353_v22, %v352_v44  ;;  %v360_v16 = vor.u32 %v359_v52, %v358_v62  ;;  %v366_v15 = vor.u32 %v365_v56, %v364_v1  ;;  %v1363_v19 = vsub.s32 %v499_v43, %v502_v4 }
  0xdd   :  { %v210_v42 = vmul.f32 %v209_v7, %v207_v21  ;;  %v357_v28 = vor.u32 %v356_v61, %v355_v10  ;;  %vm370_vm12 = vcmp.lt.s32.totalorder %v1291_v8, 4  ;;  %v216_v49 = vsel %vm1325_vm10, 0, %v214_v60 }
  0xde   :  { %vm441_vm13 = vcmp.lt.s32.totalorder %v1069_v2, 0  ;;  %v525_v30 = vsub.s32 4, %v501_v29  ;;  %v376_v31 = vsel %vm370_vm12, %v363_v35, 920167782  ;;  %v505_v12 = vsub.s32 0, %v1363_v19 }
  0xdf   :  { %v211_v41 = vxor.u32 2147483648, %v210_v42  ;;  %v343_v34 = vor.u32 8388608, %v342_v26  ;;  %v351_v38 = vshrl.u32 %v952_v36, %v1294_v9  ;;  %vm367_vm14 = vcmp.lt.s32.totalorder %v1291_v8, 1 }
  0xe0   :  { %vm369_vm15 = vcmp.lt.s32.totalorder %v1291_v8, 3  ;;  %v372_v5 = vsel %vm370_vm12, %v360_v16, 2102212464  ;;  %v380_v14 = vsel %vm370_vm12, %v366_v15, 1326507024  ;;  %v926_v20 = vpop.eup %925  ;;  %vm327_vm0 = vcmp.eq.s32.totalorder %v1355_v25, 0 }
  0xe1   :  { %v212_v43 = vsel %vm129_vm7, %v211_v41, %v210_v42  ;;  %v881_v60 = vmin.u32 %v505_v12, %v1363_v19  ;;  %v375_v44 = vsel %vm367_vm14, %v354_v32, %v357_v28  ;;  %v377_v9 = vsel %vm369_vm15, %v360_v16, %v376_v31 }
  0xe2   :  { %v215_v22 = vsel %vm1325_vm10, %v1065_v51, %v212_v43  ;;  %v526_v6 = vsel %vm441_vm13, %v525_v30, %v501_v29  ;;  %v379_v45 = vsel %vm367_vm14, %v357_v28, %v360_v16  ;;  %v381_v48 = vsel %vm369_vm15, %v363_v35, %v380_v14  ;;  %v928_v52 = vpop.eup %927 }
  0xe3   :  { %929 = vcosq.f32 %v215_v22  ;;  %v220_v53 = vadd.s32 3, %v216_v49  ;;  %v507_v55 = vclz %v881_v60  ;;  %vm368_vm1 = vcmp.lt.s32.totalorder %v1291_v8, 2 }
  0xe4   :  { %v371_v56 = vsel %vm367_vm14, %v351_v38, %v354_v32  ;;  %v373_v40 = vsel %vm369_vm15, %v357_v28, %v372_v5  ;;  %v378_v57 = vsel %vm368_vm1, %v375_v44, %v377_v9  ;;  %v383_v29 = vshll.u32 %v343_v34, 8 }
  0xe5   :  { %vm326_vm2 = vcmp.lt.s32.totalorder %v1355_v25, 2  ;;  %931 = vsinq.f32 %v215_v22  ;;  %v882_v61 = vadd.s32 4294967294, %v507_v55  ;;  %v528_v26 = vsel %vm1359_vm11, 0, %v526_v6 }
  0xe6   :  { %v382_v62 = vsel %vm368_vm1, %v379_v45, %v381_v48  ;;  %v328_v35 = vxor.u32 2147483648, %v928_v52  ;;  %v331_v1 = vxor.u32 2147483648, %v926_v20  ;;  %vm330_vm3 = vcmp.eq.s32.totalorder %v1355_v25, 2 }
  0xe7   :  { %v1403_v21 = vmul.u32.u64.low %v383_v29, %v382_v62  ;;  %v1404_v7 = vmul.u32.u64.high %v383_v29, %v382_v62, %v1403_v21  ;;  %vm883_vm4 = vcmp.lt.s32.totalorder %v882_v61, 0  ;;  %v1411_v32 = vand.u32 3, %v220_v53 }
  0xe8   :  { %v1407_v4 = vmul.u32.u64.low %v383_v29, %v378_v57  ;;  %v1408_v10 = vmul.u32.u64.high %v383_v29, %v378_v57, %v1407_v4  ;;  %v495_v16 = vadd.s32 %v1286_v17, %v1277_v59  ;;  %v510_v15 = vsel %vm883_vm4, 0, %v882_v61 }
  0xe9   :  { %v532_v42 = vadd.s32 3, %v528_v26  ;;  %v511_v28 = vsub.s32 32, %v510_v15  ;;  %v515_v49 = vsub.s32 4294967266, %v510_v15  ;;  %v374_v30 = vsel %vm368_vm1, %v371_v56, %v373_v40 }
  0xea   :  { %v647_v31 = vand.u32 2147483647, %v1078_v23  ;;  %vm323_vm5 = vweird.f32 %v1063_v50  ;;  %v329_v41 = vsel %vm327_vm0, %v926_v20, %v328_v35  ;;  %v332_v12 = vsel %vm330_vm3, %v331_v1, %v928_v52 }
  0xeb   :  { %v512_v34 = vshll.u32 %v1363_v19, %v510_v15  ;;  %vm392_vm6 = vc.u32 %v1404_v7, %v1407_v4  ;;  %v513_v59 = vshrl.u32 %v495_v16, %v511_v28  ;;  %v516_v17 = vadd.s32 127, %v515_v49 }
  0xec   :  { %v393_v38 = vadd.s32 1, %v1408_v10  ;;  %v665_v8 = vshrl.u32 %v950_v27, %v1301_v0  ;;  %v1427_v5 = vand.u32 3, %v532_v42  ;;  %v390_v14 = vmul.u32 %v383_v29, %v374_v30 }
  0xed   :  { %v664_v43 = vshll.u32 %v952_v36, %v1215_v46  ;;  %v668_v20 = vshrl.u32 %v951_v33, %v1301_v0  ;;  %v930_v19 = vpop.eup %929  ;;  %vm223_vm7 = vcmp.eq.s32.totalorder %v1411_v32, 0  ;;  %vm226_vm8 = vcmp.eq.s32.totalorder %v1411_v32, 2 }
  0xee   :  { %v514_v60 = vor.u32 %v513_v59, %v512_v34  ;;  %v517_v44 = vshll.u32 %v516_v17, 23  ;;  %v394_v9 = vsel %vm392_vm6, %v393_v38, %v1408_v10  ;;  %v674_v22 = vshrl.u32 %v954_v47, %v1301_v0 }
  0xef   :  { %v333_v6 = vsel %vm326_vm2, %v329_v41, %v332_v12  ;;  %v395_v45 = vadd.s32 %v394_v9, %v390_v14  ;;  %v654_v48 = vand.u32 8388607, %v647_v31  ;;  %v671_v52 = vshrl.u32 %v953_v39, %v1301_v0  ;;  %v932_v53 = vpop.eup %931  ;;  %v765_v12 = vpop.permute.xlu1 %764 }
  0xf0   :  { %v518_v55 = vor.u32 4788187, %v517_v44  ;;  %v666_v56 = vor.u32 %v665_v8, %v664_v43  ;;  %v667_v40 = vshll.u32 %v950_v27, %v1215_v46  ;;  %v673_v57 = vshll.u32 %v953_v39, %v1215_v46  ;;  %v1476_v43 = vpop.permute.xlu0 %759 }
  0xf1   :  { %v227_v29 = vxor.u32 2147483648, %v930_v19  ;;  %v396_v61 = vadd.s32 536870912, %v395_v45  ;;  %v670_v25 = vshll.u32 %v951_v33, %v1215_v46  ;;  %v677_v26 = vshrl.u32 %v955_v58, %v1301_v0 }
  0xf2   :  { %v519_v62 = vand.u32 2147483647, %v518_v55  ;;  %v521_v35 = vcvt.s32.f32 %v514_v60  ;;  %v669_v1 = vor.u32 %v668_v20, %v667_v40  ;;  %v675_v21 = vor.u32 %v674_v22, %v673_v57 }
  0xf3   :  { %v224_v10 = vxor.u32 2147483648, %v932_v53  ;;  %v1452_v16 = vshrl.u32 %v396_v61, 30  ;;  %v672_v15 = vor.u32 %v671_v52, %v670_v25  ;;  %v676_v42 = vshll.u32 %v954_v47, %v1215_v46 }
  0xf4   :  { %v334_v28 = vsel %vm323_vm5, nan, %v333_v6  ;;  %v522_v49 = vmul.f32 %v521_v35, %v519_v62  ;;  %v655_v30 = vor.u32 8388608, %v654_v48  ;;  %v663_v41 = vshrl.u32 %v952_v36, %v1301_v0 }
  0xf5   :  { %v398_v34 = vshll.u32 %v1452_v16, 30  ;;  %v678_v59 = vor.u32 %v677_v26, %v676_v42  ;;  %vm679_vm9 = vcmp.lt.s32.totalorder %v1298_v63, 1  ;;  %vm682_vm10 = vcmp.lt.s32.totalorder %v1298_v63, 4 }
  0xf6   :  { %v523_v17 = vxor.u32 2147483648, %v522_v49  ;;  %vm681_vm12 = vcmp.lt.s32.totalorder %v1298_v63, 3  ;;  %v687_v50 = vsel %vm679_vm9, %v666_v56, %v669_v1  ;;  %v688_v46 = vsel %vm682_vm10, %v675_v21, 920167782 }
  0xf7   :  { %v225_v0 = vsel %vm223_vm7, %v930_v19, %v224_v10  ;;  %v228_v38 = vsel %vm226_vm8, %v227_v29, %v932_v53  ;;  %v1472_v8 = vsub.s32 %v395_v45, %v398_v34  ;;  %v689_v14 = vsel %vm681_vm12, %v672_v15, %v688_v46  ;;  %v1497_v53 = vpop.permute.xlu1 %774 }
  0xf8   :  { %v524_v20 = vsel %vm441_vm13, %v523_v17, %v522_v49  ;;  %vm680_vm14 = vcmp.lt.s32.totalorder %v1298_v63, 2  ;;  %v684_v60 = vsel %vm682_vm10, %v672_v15, 2102212464  ;;  %v691_v19 = vsel %vm679_vm9, %v669_v1, %v672_v15  ;;  %v802_v49 = vld [vmem:[%s1743_s4 + $0x18] sm:$0xff] }
  0xf9   :  { %v527_v44 = vsel %vm1359_vm11, %v1069_v2, %v524_v20  ;;  %v401_v9 = vsub.s32 0, %v1472_v8  ;;  %v690_v22 = vsel %vm680_vm14, %v687_v50, %v689_v14  ;;  %v692_v6 = vsel %vm682_vm10, %v678_v59, 1326507024 }
  0xfa   :  { %933 = vcosq.f32 %v527_v44  ;;  %v683_v45 = vsel %vm679_vm9, %v663_v41, %v666_v56  ;;  %v693_v48 = vsel %vm681_vm12, %v675_v21, %v692_v6  ;;  %v695_v52 = vshll.u32 %v655_v30, 8 }
  0xfb   :  { %935 = vsinq.f32 %v527_v44  ;;  %v877_v11 = vmin.u32 %v401_v9, %v1472_v8  ;;  %v685_v55 = vsel %vm681_vm12, %v669_v1, %v684_v60  ;;  %v694_v40 = vsel %vm680_vm14, %v691_v19, %v693_v48  ;;  %v1518_v1 = vpop.permute.xlu0 %769  ;;  %v1548_v30 = vpop.permute.xlu1 %784 }
  0xfc   :  { %v1504_v57 = vmul.u32.u64.low %v695_v52, %v694_v40  ;;  %v1505_v29 = vmul.u32.u64.high %v695_v52, %v694_v40, %v1504_v57  ;;  %v1507_v61 = vmul.u32.u64.low %v695_v52, %v690_v22  ;;  %v1508_v56 = vmul.u32.u64.high %v695_v52, %v690_v22, %v1507_v61 }
  0xfd   :  { %v1512_v25 = vshrl.u32 %v1202_v37, 5  ;;  %vm222_vm11 = vcmp.lt.s32.totalorder %v1411_v32, 2  ;;  %v403_v26 = vclz %v877_v11  ;;  %v421_v62 = vsub.s32 4, %v1452_v16 }
  0xfe   :  { %vm219_vm13 = vweird.f32 %v1065_v51  ;;  %v229_v35 = vsel %vm222_vm11, %v225_v0, %v228_v38  ;;  %vm337_vm15 = vcmp.lt.s32.totalorder %v1071_v3, 0  ;;  %v686_v21 = vsel %vm680_vm14, %v683_v45, %v685_v55 }
  0xff   :  { %v1522_v10 = vmul.f32 %v765_v12, %v334_v28  ;;  %vm535_vm0 = vcmp.eq.s32.totalorder %v1427_v5, 0  ;;  %vm538_vm1 = vcmp.eq.s32.totalorder %v1427_v5, 2  ;;  %v878_v37 = vadd.s32 4294967294, %v403_v26  ;;  %v1577_v40 = vpop.permute.xlu1 %812 }
 0x100   :  { %v543_v32 = vand.u32 2147483647, %v1080_v24  ;;  %vm534_vm2 = vcmp.lt.s32.totalorder %v1427_v5, 2  ;;  %v391_v15 = vadd.s32 %v1407_v4, %v1404_v7  ;;  %vm704_vm3 = vc.u32 %v1505_v29, %v1507_v61 }
 0x101   :  { %v705_v63 = vadd.s32 1, %v1508_v56  ;;  %v561_v42 = vshrl.u32 %v950_v27, %v1306_v13  ;;  %v230_v28 = vsel %vm219_vm13, nan, %v229_v35  ;;  %vm1539_vm4 = vcmp.le.f32.partialorder %v335_v18, 0.7853982 }
 0x102   :  { %vm879_vm5 = vcmp.lt.s32.totalorder %v878_v37, 0  ;;  %v1546_v7 = vsel %vm337_vm15, %v421_v62, %v1452_v16  ;;  %v702_v4 = vmul.u32 %v695_v52, %v686_v21  ;;  %v560_v51 = vshll.u32 %v952_v36, %v1274_v54 }
 0x103   :  { %v406_v41 = vsel %vm879_vm5, 0, %v878_v37  ;;  %v706_v12 = vsel %vm704_vm3, %v705_v63, %v1508_v56  ;;  %v563_v18 = vshll.u32 %v950_v27, %v1274_v54  ;;  %vm531_vm6 = vweird.f32 %v1069_v2  ;;  %v1565_v27 = vpop.permute.xlu0 %779 }
 0x104   :  { %v407_v34 = vsub.s32 32, %v406_v41  ;;  %v411_v59 = vsub.s32 4294967266, %v406_v41  ;;  %v707_v17 = vadd.s32 %v706_v12, %v702_v4  ;;  %v1558_v16 = vand.u32 8388607, %v543_v32  ;;  %v934_v50 = vpop.eup %933 }
 0x105   :  { %v408_v46 = vshll.u32 %v1472_v8, %v406_v41  ;;  %v562_v0 = vor.u32 %v561_v42, %v560_v51  ;;  %v564_v38 = vshrl.u32 %v951_v33, %v1306_v13  ;;  %v567_v14 = vshrl.u32 %v953_v39, %v1306_v13  ;;  %v936_v20 = vpop.eup %935 }
 0x106   :  { %v539_v60 = vxor.u32 2147483648, %v934_v50  ;;  %v409_v19 = vshrl.u32 %v391_v15, %v407_v34  ;;  %v412_v44 = vadd.s32 127, %v411_v59  ;;  %v708_v9 = vadd.s32 536870912, %v707_v17 }
 0x107   :  { %v536_v22 = vxor.u32 2147483648, %v936_v20  ;;  %v566_v6 = vshll.u32 %v951_v33, %v1274_v54  ;;  %v570_v8 = vshrl.u32 %v954_v47, %v1306_v13  ;;  %v573_v45 = vshrl.u32 %v955_v58, %v1306_v13  ;;  %v808_v42 = vpop.permute.xlu0 %807 }
 0x108   :  { %v540_v48 = vsel %vm538_vm1, %v539_v60, %v936_v20  ;;  %v410_v52 = vor.u32 %v409_v19, %v408_v46  ;;  %v413_v11 = vshll.u32 %v412_v44, 23  ;;  %v1575_v55 = vshrl.u32 %v708_v9, 30 }
 0x109   :  { %v537_v57 = vsel %vm535_vm0, %v934_v50, %v536_v22  ;;  %v565_v56 = vor.u32 %v564_v38, %v563_v18  ;;  %v568_v33 = vor.u32 %v567_v14, %v566_v6  ;;  %v569_v26 = vshll.u32 %v953_v39, %v1274_v54 }
 0x10a   :  { %v541_v58 = vsel %vm534_vm2, %v537_v57, %v540_v48  ;;  %v414_v62 = vor.u32 4788187, %v413_v11  ;;  %v710_v35 = vshll.u32 %v1575_v55, 30  ;;  %v572_v21 = vshll.u32 %v954_v47, %v1274_v54 }
 0x10b   :  { %v1589_v37 = vmul.f32 %v1476_v43, %v230_v28  ;;  %v424_v15 = vsel %vm1539_vm4, 0, %v1546_v7  ;;  %v559_v63 = vshrl.u32 %v952_v36, %v1306_v13  ;;  %v571_v39 = vor.u32 %v570_v8, %v569_v26  ;;  %v823_v7 = vpop.permute.xlu1 %822  ;;  %v818_v14 = vpop.permute.xlu0 %817  ;;  %v800_v8 = vld [vmem:[%s1743_s4 + $0x8] sm:$0xff] }
 0x10c   :  { %v415_v5 = vand.u32 2147483647, %v414_v62  ;;  %v417_v4 = vcvt.s32.f32 %v410_v52  ;;  %v1596_v41 = vsub.s32 %v707_v17, %v710_v35  ;;  %v574_v12 = vor.u32 %v573_v45, %v572_v21  ;;  %v799_v45 = vld [vmem:[%s1743_s4] sm:$0xff] }
 0x10d   :  { %v542_v47 = vsel %vm531_vm6, nan, %v541_v58  ;;  %v551_v54 = vor.u32 8388608, %v1558_v16  ;;  %vm575_vm7 = vcmp.lt.s32.totalorder %v1512_v25, 1  ;;  %vm578_vm8 = vcmp.lt.s32.totalorder %v1512_v25, 4 }
 0x10e   :  { %v418_v43 = vmul.f32 %v417_v4, %v415_v5  ;;  %v713_v28 = vsub.s32 0, %v1596_v41  ;;  %v580_v36 = vsel %vm578_vm8, %v568_v33, 2102212464  ;;  %v583_v13 = vsel %vm575_vm7, %v562_v0, %v565_v56 }
 0x10f   :  { %vm576_vm9 = vcmp.lt.s32.totalorder %v1512_v25, 2  ;;  %vm577_vm10 = vcmp.lt.s32.totalorder %v1512_v25, 3  ;;  %v584_v2 = vsel %vm578_vm8, %v571_v39, 920167782  ;;  %v587_v51 = vsel %vm575_vm7, %v565_v56, %v568_v33  ;;  %v833_v11 = vpop.permute.xlu1 %832  ;;  %v828_v25 = vpop.permute.xlu0 %827 }
 0x110   :  { %v419_v18 = vxor.u32 2147483648, %v418_v43  ;;  %v889_v34 = vmin.u32 %v713_v28, %v1596_v41  ;;  %v585_v59 = vsel %vm577_vm10, %v568_v33, %v584_v2  ;;  %v588_v17 = vsel %vm578_vm8, %v574_v12, 1326507024 }
 0x111   :  { %v579_v16 = vsel %vm575_vm7, %v559_v63, %v562_v0  ;;  %v581_v50 = vsel %vm577_vm10, %v565_v56, %v580_v36  ;;  %v586_v46 = vsel %vm576_vm9, %v583_v13, %v585_v59  ;;  %v589_v38 = vsel %vm577_vm10, %v571_v39, %v588_v17  ;;  %v803_v63 = vld [vmem:[%s1743_s4 + $0x20] sm:$0xff] }
 0x112   :  { %v420_v20 = vsel %vm337_vm15, %v419_v18, %v418_v43  ;;  %v715_v60 = vclz %v889_v34  ;;  %v590_v19 = vsel %vm576_vm9, %v587_v51, %v589_v38  ;;  %v591_v44 = vshll.u32 %v551_v54, 8 }
 0x113   :  { %v790_v9 = vmul.f32 %v1497_v53, %v542_v47  ;;  %v423_v0 = vsel %vm1539_vm4, %v1071_v3, %v420_v20  ;;  %v428_v22 = vadd.s32 3, %v424_v15  ;;  %v703_v6 = vadd.s32 %v1507_v61, %v1505_v29  ;;  %v801_v29 = vld [vmem:[%s1743_s4 + $0x10] sm:$0xff]  ;;  %v804_v61 = vld [vmem:[%s1743_s4 + $0x28] sm:$0xff] }
 0x114   :  { %937 = vcosq.f32 %v423_v0  ;;  %v890_v48 = vadd.s32 4294967294, %v715_v60  ;;  %v1631_v52 = vmul.u32.u64.low %v591_v44, %v590_v19  ;;  %v1632_v53 = vmul.u32.u64.high %v591_v44, %v590_v19, %v1631_v52 }
 0x115   :  { %939 = vsinq.f32 %v423_v0  ;;  %v582_v57 = vsel %vm576_vm9, %v579_v16, %v581_v50  ;;  %v1645_v56 = vmul.u32.u64.low %v591_v44, %v586_v46  ;;  %v1646_v33 = vmul.u32.u64.high %v591_v44, %v586_v46, %v1645_v56 }
 0x116   :  { %vm891_vm12 = vcmp.lt.s32.totalorder %v890_v48, 0  ;;  %vm847_vm14 = vcmask 31744   ;;  %v836_v26 = vmul.f32 %v1577_v40, %v800_v8  ;;  %v835_v58 = vmul.f32 %v808_v42, %v799_v45 }
 0x117   :  { %v718_v62 = vsel %vm891_vm12, 0, %v890_v48  ;;  %v838_v35 = vmul.f32 %v823_v7, %v802_v49  ;;  %v837_v21 = vmul.f32 %v818_v14, %v801_v29  ;;  %v1650_v15 = vmul.f32 %v833_v11, %v804_v61 }
 0x118   :  { %v719_v39 = vsub.s32 32, %v718_v62  ;;  %v720_v5 = vshll.u32 %v1596_v41, %v718_v62  ;;  %v723_v4 = vsub.s32 4294967266, %v718_v62  ;;  %v598_v12 = vmul.u32 %v591_v44, %v582_v57  ;;  %855 = vst.msk [vmem:[%s1744_s6 + $0x8] sm:$0xff] %vm847_vm14, %v836_v26  ;;  %854 = vst.msk [vmem:[%s1744_s6] sm:$0xff] %vm847_vm14, %v835_v58 }
 0x119   :  { %vm600_vm11 = vc.u32 %v1632_v53, %v1645_v56  ;;  %v601_v40 = vadd.s32 1, %v1646_v33  ;;  %v842_v42 = vadd.f32 %v836_v26, %v1522_v10  ;;  %v841_v41 = vadd.f32 %v835_v58, %v1589_v37  ;;  %857 = vst.msk [vmem:[%s1744_s6 + $0x18] sm:$0xff] %vm847_vm14, %v838_v35  ;;  %856 = vst.msk [vmem:[%s1744_s6 + $0x10] sm:$0xff] %vm847_vm14, %v837_v21 }
 0x11a   :  { %859 = vst.msk [vmem:[%s1744_s6 + $0x28] sm:$0xff] %vm847_vm14, %v1650_v15  ;;  %v721_v47 = vshrl.u32 %v703_v6, %v719_v39  ;;  %v724_v10 = vadd.s32 127, %v723_v4  ;;  %v844_v54 = vadd.f32 %v838_v35, %v790_v9  ;;  %v1682_v37 = vmul.f32 %v828_v25, %v803_v63 }
 0x11b   :  { %v429_v43 = vand.u32 3, %v428_v22  ;;  %v602_v28 = vsel %vm600_vm11, %v601_v40, %v1646_v33  ;;  %849 = vst.msk [vmem:[%s1745_s5 + $0x8] sm:$0xff] %vm847_vm14, %v842_v42  ;;  %848 = vst.msk [vmem:[%s1745_s5] sm:$0xff] %vm847_vm14, %v841_v41  ;;  %v733_v60 = vsub.s32 4, %v1575_v55  ;;  %vm427_vm1 = vweird.f32 %v1071_v3 }
 0x11c   :  { %v722_v36 = vor.u32 %v721_v47, %v720_v5  ;;  %v725_v13 = vshll.u32 %v724_v10, 23  ;;  %v603_v7 = vadd.s32 %v602_v28, %v598_v12  ;;  %851 = vst.msk [vmem:[%s1745_s5 + $0x18] sm:$0xff] %vm847_vm14, %v844_v54  ;;  %858 = vst.msk [vmem:[%s1744_s6 + $0x20] sm:$0xff] %vm847_vm14, %v1682_v37  ;;  %vm649_vm2 = vcmp.lt.s32.totalorder %v1078_v23, 0 }
 0x11d   :  { %vm434_vm13 = vcmp.eq.s32.totalorder %v429_v43, 2  ;;  %vm430_vm15 = vcmp.lt.s32.totalorder %v429_v43, 2  ;;  %vm431_vm0 = vcmp.eq.s32.totalorder %v429_v43, 0  ;;  %vm648_vm3 = vcmp.le.f32.partialorder %v647_v31, 0.7853982 }
 0x11e   :  { %v938_v2 = vpop.eup %937  ;;  %v726_v51 = vor.u32 4788187, %v725_v13  ;;  %v604_v18 = vadd.s32 536870912, %v603_v7  ;;  %v729_v50 = vcvt.s32.f32 %v722_v36  ;;  %v734_v45 = vsel %vm649_vm2, %v733_v60, %v1575_v55 }
 0x11f   :  { %v940_v34 = vpop.eup %939  ;;  %v435_v59 = vxor.u32 2147483648, %v938_v2  ;;  %v736_v29 = vsel %vm648_vm3, 0, %v734_v45  ;;  %v599_v55 = vadd.s32 %v1645_v56, %v1632_v53  ;;  %vm739_vm8 = vweird.f32 %v1078_v23 }
 0x120   :  { %v432_v17 = vxor.u32 2147483648, %v940_v34  ;;  %v727_v16 = vand.u32 2147483647, %v726_v51  ;;  %v1702_v46 = vshrl.u32 %v604_v18, 30  ;;  %v740_v61 = vadd.s32 3, %v736_v29 }
 0x121   :  { %v436_v38 = vsel %vm434_vm13, %v435_v59, %v940_v34  ;;  %vm545_vm9 = vcmp.lt.s32.totalorder %v1080_v24, 0  ;;  %vm544_vm10 = vcmp.le.f32.partialorder %v543_v32, 0.7853982 }
 0x122   :  { %v433_v14 = vsel %vm431_vm0, %v938_v2, %v432_v17  ;;  %v730_v20 = vmul.f32 %v729_v50, %v727_v16  ;;  %v606_v19 = vshll.u32 %v1702_v46, 30  ;;  %v741_v57 = vand.u32 3, %v740_v61 }
 0x123   :  { %v437_v44 = vsel %vm430_vm15, %v433_v14, %v436_v38  ;;  %v629_v43 = vsub.s32 4, %v1702_v46  ;;  %vm635_vm15 = vweird.f32 %v1080_v24 }
 0x124   :  { %v438_v9 = vsel %vm427_vm1, nan, %v437_v44  ;;  %v731_v0 = vxor.u32 2147483648, %v730_v20  ;;  %v607_v22 = vsub.s32 %v603_v7, %v606_v19  ;;  %vm746_vm5 = vcmp.eq.s32.totalorder %v741_v57, 2 }
 0x125   :  { %v789_v6 = vmul.f32 %v1518_v1, %v438_v9  ;;  %vm743_vm6 = vcmp.eq.s32.totalorder %v741_v57, 0  ;;  %vm742_vm7 = vcmp.lt.s32.totalorder %v741_v57, 2  ;;  %v630_v13 = vsel %vm545_vm9, %v629_v43, %v1702_v46 }
 0x126   :  { %v732_v8 = vsel %vm649_vm2, %v731_v0, %v730_v20  ;;  %v609_v48 = vsub.s32 0, %v607_v22  ;;  %v632_v7 = vsel %vm544_vm10, 0, %v630_v13 }
 0x127   :  { %v735_v52 = vsel %vm648_vm3, %v1078_v23, %v732_v8  ;;  %v843_v49 = vadd.f32 %v837_v21, %v789_v6 }
 0x128   :  { %941 = vcosq.f32 %v735_v52  ;;  %v885_v3 = vmin.u32 %v609_v48, %v607_v22 }
 0x129   :  { %943 = vsinq.f32 %v735_v52  ;;  %850 = vst.msk [vmem:[%s1745_s5 + $0x10] sm:$0xff] %vm847_vm14, %v843_v49 }
 0x12a   :  { %v611_v1 = vclz %v885_v3 }
 0x12c   :  { %v886_v11 = vadd.s32 4294967294, %v611_v1 }
 0x12e   :  { %vm887_vm4 = vcmp.lt.s32.totalorder %v886_v11, 0 }
 0x12f   :  { %v614_v31 = vsel %vm887_vm4, 0, %v886_v11 }
 0x130   :  { %v615_v33 = vsub.s32 32, %v614_v31  ;;  %v619_v26 = vsub.s32 4294967266, %v614_v31  ;;  %v616_v62 = vshll.u32 %v607_v22, %v614_v31 }
 0x132   :  { %v942_v58 = vpop.eup %941  ;;  %v617_v35 = vshrl.u32 %v599_v55, %v615_v33  ;;  %v620_v21 = vadd.s32 127, %v619_v26 }
 0x133   :  { %v944_v63 = vpop.eup %943  ;;  %v747_v25 = vxor.u32 2147483648, %v942_v58 }
 0x134   :  { %v744_v39 = vxor.u32 2147483648, %v944_v63  ;;  %v618_v5 = vor.u32 %v617_v35, %v616_v62  ;;  %v621_v4 = vshll.u32 %v620_v21, 23 }
 0x135   :  { %v748_v12 = vsel %vm746_vm5, %v747_v25, %v944_v63 }
 0x136   :  { %v745_v40 = vsel %vm743_vm6, %v942_v58, %v744_v39  ;;  %v622_v42 = vor.u32 4788187, %v621_v4  ;;  %v625_v47 = vcvt.s32.f32 %v618_v5 }
 0x137   :  { %v749_v53 = vsel %vm742_vm7, %v745_v40, %v748_v12 }
 0x138   :  { %v750_v56 = vsel %vm739_vm8, nan, %v749_v53  ;;  %v623_v41 = vand.u32 2147483647, %v622_v42 }
 0x139   :  { %v792_v10 = vmul.f32 %v1548_v30, %v750_v56 }
 0x13a   :  { %v626_v54 = vmul.f32 %v625_v47, %v623_v41 }
 0x13b   :  { %v846_v28 = vadd.f32 %v1650_v15, %v792_v10  ;;  %v636_v15 = vadd.s32 3, %v632_v7 }
 0x13c   :  { %v627_v36 = vxor.u32 2147483648, %v626_v54 }
 0x13d   :  { %853 = vst.msk [vmem:[%s1745_s5 + $0x28] sm:$0xff] %vm847_vm14, %v846_v28  ;;  %v637_v2 = vand.u32 3, %v636_v15 }
 0x13e   :  { %v628_v23 = vsel %vm545_vm9, %v627_v36, %v626_v54 }
 0x13f   :  { %v631_v30 = vsel %vm544_vm10, %v1080_v24, %v628_v23  ;;  %vm642_vm12 = vcmp.eq.s32.totalorder %v637_v2, 2  ;;  %vm639_vm11 = vcmp.eq.s32.totalorder %v637_v2, 0  ;;  %vm638_vm13 = vcmp.lt.s32.totalorder %v637_v2, 2 }
 0x140   :  { %945 = vcosq.f32 %v631_v30 }
 0x141   :  { %947 = vsinq.f32 %v631_v30 }
 0x14a   :  { %v946_v51 = vpop.eup %945 }
 0x14b   :  { %v948_v18 = vpop.eup %947  ;;  %v643_v34 = vxor.u32 2147483648, %v946_v51 }
 0x14c   :  { %v640_v59 = vxor.u32 2147483648, %v948_v18 }
 0x14d   :  { %v644_v17 = vsel %vm642_vm12, %v643_v34, %v948_v18 }
 0x14e   :  { %v641_v16 = vsel %vm639_vm11, %v946_v51, %v640_v59 }
 0x14f   :  { %v645_v32 = vsel %vm638_vm13, %v641_v16, %v644_v17 }
 0x150   :  { %v646_v50 = vsel %vm635_vm15, nan, %v645_v32 }
 0x151   :  { %v791_v46 = vmul.f32 %v1565_v27, %v646_v50 }
 0x153   :  { %v845_v38 = vadd.f32 %v1682_v37, %v791_v46 }
 0x155   :  { %852 = vst.msk [vmem:[%s1745_s5 + $0x20] sm:$0xff] %vm847_vm14, %v845_v38 }

</bundles_post_ra>
